<compile_context>
chip_gen: v7x
topology: tpu7x:2x2x1
jax: 0.10.0
libtpu: 0.0.40
codegen_flags: <defaults>
</compile_context>

<pallas_src>
import functools

import jax
import jax.numpy as jnp
from jax.experimental import pallas as pl
from jax.experimental.pallas import tpu as pltpu


# ----------------------------------------------------------------------------
# Pallas kernel: fused conv1d (per-tap matmuls) + folded bias/BN(eval) + ReLU
# ----------------------------------------------------------------------------
def _conv1d_bn_relu_kernel(x_ref, w_ref, shift_ref, o_ref, *, K, pad, L_out):
    """One batch element, NCW-native.

    x_ref    : (Cin, L)          f32  activation (channels on sublanes, time on lanes)
    w_ref    : (K, Cout_p, Cin)  f32  per-tap weights, BN scale already folded in
    shift_ref: (Cout_p, 1)       f32  folded conv-bias + BN shift
    o_ref    : (Cout_p, L_out)        output block (NCW), bf16 or f32
    """
    x = x_ref[...]
    cin, L = x.shape

    need_mask = any((pad - t) != 0 for t in range(K))
    col = jax.lax.broadcasted_iota(jnp.int32, (cin, L), 1) if need_mask else None

    acc = None
    for t in range(K):                                # K is small & static: unrolled
        s = pad - t                                   # static per-tap time shift
        if s == 0:
            x_t = x
        else:
            # Circular lane rotation (XLU); zero the wrapped halo columns so the
            # 'same' zero-padding is reproduced without any HBM jnp.pad pass.
            x_t = pltpu.roll(x, shift=s % L, axis=1)
            if s > 0:
                x_t = jnp.where(col >= s, x_t, 0.0)       # left padding region
            else:
                x_t = jnp.where(col < L + s, x_t, 0.0)    # right padding region
        y_t = jnp.dot(w_ref[t], x_t, preferred_element_type=jnp.float32)
        acc = y_t if acc is None else acc + y_t

    # Fused epilogue: folded conv-bias + BN shift, then ReLU; cast only at the store.
    acc = acc + shift_ref[...]                        # (Cout_p, L) + (Cout_p, 1)
    acc = jnp.maximum(acc, 0.0)
    o_ref[...] = acc[:, :L_out].astype(o_ref.dtype)


# ----------------------------------------------------------------------------
# Wrapper: PyTorch-layout BasicConv1d forward (inference)
# ----------------------------------------------------------------------------
def basic_conv1d(x, weight, bias=None, *, bn=None, padding=0, eps=1e-3,
                 out_dtype=jnp.bfloat16):
    """relu(bn(conv1d(x)))  with stride=1.

    x      : (B, Cin, L)    float32, PyTorch NCW layout (used as-is, no transpose)
    weight : (Cout, Cin, K) float32, PyTorch Conv1d weight
    bias   : (Cout,) or None
    bn     : None, or dict(gamma, beta, running_mean, running_var) -> BatchNorm1d eval
    Returns: (B, Cout, L_out) in `out_dtype` (bf16 by default to halve HBM stores).
    """
    B, Cin, L = x.shape
    Cout, _, K = weight.shape
    pad = int(padding)
    L_out = L + 2 * pad - K + 1

    # Fold conv bias + eval-mode BatchNorm into per-channel scale / shift (f32).
    w = weight.astype(jnp.float32)
    b = jnp.zeros((Cout,), jnp.float32) if bias is None else bias.astype(jnp.float32)
    if bn is not None:
        scale = bn["gamma"].astype(jnp.float32) * jax.lax.rsqrt(
            bn["running_var"].astype(jnp.float32) + eps)
        shift = (b - bn["running_mean"].astype(jnp.float32)) * scale \
            + bn["beta"].astype(jnp.float32)
    else:
        scale = jnp.ones((Cout,), jnp.float32)
        shift = b

    # Fold the BN scale into the weight so the kernel epilogue is add+relu only.
    w = w * scale[:, None, None]

    # (Cout, Cin, K) -> (K, Cout, Cin): one small LHS matrix per tap.
    w_taps = jnp.transpose(w, (2, 0, 1))

    # Pad Cout to a multiple of 16 sublanes (zero weight rows -> zero outputs, sliced off).
    Cout_p = ((Cout + 15) // 16) * 16
    if Cout_p != Cout:
        w_taps = jnp.pad(w_taps, ((0, 0), (0, Cout_p - Cout), (0, 0)))
        shift = jnp.pad(shift, (0, Cout_p - Cout))
    shift2 = shift.reshape(Cout_p, 1)

    kern = functools.partial(_conv1d_bn_relu_kernel, K=K, pad=pad, L_out=L_out)
    out = pl.pallas_call(
        kern,
        out_shape=jax.ShapeDtypeStruct((B, Cout_p, L_out), out_dtype),
        grid=(B,),
        in_specs=[
            pl.BlockSpec((None, Cin, L), lambda n: (n, 0, 0)),     # x, NCW as-is
            pl.BlockSpec((K, Cout_p, Cin), lambda n: (0, 0, 0)),   # per-tap weights
            pl.BlockSpec((Cout_p, 1), lambda n: (0, 0)),           # folded shift
        ],
        out_specs=pl.BlockSpec((None, Cout_p, L_out), lambda n: (n, 0, 0)),
        compiler_params=pltpu.CompilerParams(dimension_semantics=("parallel",)),
    )(x.astype(jnp.float32), w_taps, shift2)

    if Cout_p != Cout:
        out = out[:, :Cout, :]   # cheap trailing-sublane depad (no-op when aligned)
    return out


# ----------------------------------------------------------------------------
# Pure-JAX f32 reference (for correctness check)
# ----------------------------------------------------------------------------
def reference_basic_conv1d(x, weight, bias, bn, padding, eps):
    y = jax.lax.conv_general_dilated(
        x, weight, window_strides=(1,), padding=[(padding, padding)],
        dimension_numbers=("NCH", "OIH", "NCH"))
    if bias is not None:
        y = y + bias[None, :, None]
    if bn is not None:
        scale = bn["gamma"] / jnp.sqrt(bn["running_var"] + eps)
        y = (y - bn["running_mean"][None, :, None]) * scale[None, :, None] \
            + bn["beta"][None, :, None]
    return jnp.maximum(y, 0.0)


# ----------------------------------------------------------------------------
if __name__ == "__main__":
    eps = 1e-3   # BasicConv1d uses BatchNorm1d(eps=0.001)
    key = jax.random.PRNGKey(0)

    def make_case(k, B, Cin, Cout, L, K, use_bn):
        k1, k2, k3, k4, k5, k6, k7 = jax.random.split(k, 7)
        x = jax.random.normal(k1, (B, Cin, L), jnp.float32)
        w = jax.random.normal(k2, (Cout, Cin, K), jnp.float32) * (2.0 / (Cin * K)) ** 0.5
        b = 0.1 * jax.random.normal(k3, (Cout,), jnp.float32)
        bn = None
        if use_bn:
            bn = dict(
                gamma=1.0 + 0.1 * jax.random.normal(k4, (Cout,), jnp.float32),
                beta=0.1 * jax.random.normal(k5, (Cout,), jnp.float32),
                running_mean=0.1 * jax.random.normal(k6, (Cout,), jnp.float32),
                running_var=jnp.abs(1.0 + 0.1 * jax.random.normal(k7, (Cout,), jnp.float32)),
            )
        return x, w, b, bn

    # (B, Cin, Cout, L, K, pad, use_batchnorm) -- small, deterministic cases that
    # exercise: channel padding, 'same' padding masks, no-pad masks, and 1x1 conv.
    cases = [
        (2, 16, 24, 256, 3, 1, True),    # same conv + BN, Cout not multiple of 16
        (2, 8, 32, 128, 5, 0, False),    # valid conv, no BN, L_out != L
        (2, 16, 32, 128, 1, 0, True),    # 1x1 conv + BN
    ]

    keys = jax.random.split(key, len(cases))
    for case_key, (B, Cin, Cout, L, K, pad, use_bn) in zip(keys, cases):
        x, w, b, bn = make_case(case_key, B, Cin, Cout, L, K, use_bn)
        L_out = L + 2 * pad - K + 1

        run = jax.jit(functools.partial(basic_conv1d, padding=pad, eps=eps))
        out = jax.block_until_ready(run(x, w, b, bn=bn))
        ref = reference_basic_conv1d(x, w, b, bn, pad, eps)

        assert out.shape == (B, Cout, L_out), (out.shape, (B, Cout, L_out))
        out_f32 = out.astype(jnp.float32)
        assert bool(jnp.all(jnp.isfinite(out_f32)))
        rel = jnp.max(jnp.abs(out_f32 - ref)) / jnp.maximum(1.0, jnp.max(jnp.abs(ref)))
        assert float(rel) < 2e-2, (float(rel), (B, Cin, Cout, L, K, pad, use_bn))

    print("KERNEL_OK")
</pallas_src>

<mosaic_0001>
module attributes {stable_mosaic.version = 11 : i64} {
  func.func @_conv1d_bn_relu_kernel(%arg0: i32, %arg1: memref<1x16x256xf32, #tpu.memory_space<vmem>>, %arg2: memref<3x32x16xf32, #tpu.memory_space<vmem>>, %arg3: memref<32x1xf32, #tpu.memory_space<vmem>>, %arg4: memref<1x32x256xbf16, #tpu.memory_space<vmem>>) attributes {dimension_semantics = [#tpu.dimension_semantics<parallel>], iteration_bounds = array<i64: 2>, scalar_prefetch = 0 : i64, scratch_operands = 0 : i64, tpu.core_type = #tpu.core_type<tc>, window_params = [{transform_indices = @transform_0, window_bounds = array<i64: 1, 16, 256>}, {pipeline_mode = #tpu.pipeline_mode<synchronous>, transform_indices = @transform_1, window_bounds = array<i64: 3, 32, 16>}, {pipeline_mode = #tpu.pipeline_mode<synchronous>, transform_indices = @transform_2, window_bounds = array<i64: 32, 1>}, {transform_indices = @transform_3, window_bounds = array<i64: 1, 32, 256>}]} {
    %c0 = arith.constant 0 : index
    %c0_0 = arith.constant 0 : index
    %c0_1 = arith.constant 0 : index
    %0 = vector.load %arg1[%c0, %c0_0, %c0_1] : memref<1x16x256xf32, #tpu.memory_space<vmem>>, vector<1x16x256xf32>
    %1 = vector.shape_cast %0 : vector<1x16x256xf32> to vector<16x256xf32>
    %2 = tpu.iota {dimensions = array<i32: 1>} : vector<16x256xi32>
    %c1_i32 = arith.constant 1 : i32
    %3 = tpu.dynamic_rotate %1 by %c1_i32 dim 1 : vector<16x256xf32>, i32 -> vector<16x256xf32>
    %c1_i32_2 = arith.constant 1 : i32
    %4 = vector.broadcast %c1_i32_2 : i32 to vector<16x256xi32>
    %5 = arith.cmpi sge, %2, %4 : vector<16x256xi32>
    %cst = arith.constant 0.000000e+00 : f32
    %6 = vector.broadcast %cst : f32 to vector<16x256xf32>
    %7 = arith.select %5, %3, %6 : vector<16x256xi1>, vector<16x256xf32>
    %c0_3 = arith.constant 0 : index
    %c0_4 = arith.constant 0 : index
    %c0_5 = arith.constant 0 : index
    %8 = vector.load %arg2[%c0_3, %c0_4, %c0_5] : memref<3x32x16xf32, #tpu.memory_space<vmem>>, vector<1x32x16xf32>
    %9 = vector.shape_cast %8 : vector<1x32x16xf32> to vector<32x16xf32>
    %cst_6 = arith.constant dense<0.000000e+00> : vector<32x256xf32>
    %10 = tpu.matmul %9, %7, %cst_6 {dimension_numbers = #tpu.dot_dimension_numbers<[1], [0], [0], [1], [0, 0, 1, 1], [], []>} : vector<32x16xf32>, vector<16x256xf32>, vector<32x256xf32> -> vector<32x256xf32>
    %c1 = arith.constant 1 : index
    %c0_7 = arith.constant 0 : index
    %c0_8 = arith.constant 0 : index
    %11 = vector.load %arg2[%c1, %c0_7, %c0_8] : memref<3x32x16xf32, #tpu.memory_space<vmem>>, vector<1x32x16xf32>
    %12 = vector.shape_cast %11 : vector<1x32x16xf32> to vector<32x16xf32>
    %cst_9 = arith.constant dense<0.000000e+00> : vector<32x256xf32>
    %13 = tpu.matmul %12, %1, %cst_9 {dimension_numbers = #tpu.dot_dimension_numbers<[1], [0], [0], [1], [0, 0, 1, 1], [], []>} : vector<32x16xf32>, vector<16x256xf32>, vector<32x256xf32> -> vector<32x256xf32>
    %14 = arith.addf %10, %13 : vector<32x256xf32>
    %c255_i32 = arith.constant 255 : i32
    %15 = tpu.dynamic_rotate %1 by %c255_i32 dim 1 : vector<16x256xf32>, i32 -> vector<16x256xf32>
    %c255_i32_10 = arith.constant 255 : i32
    %16 = vector.broadcast %c255_i32_10 : i32 to vector<16x256xi32>
    %17 = arith.cmpi slt, %2, %16 : vector<16x256xi32>
    %cst_11 = arith.constant 0.000000e+00 : f32
    %18 = vector.broadcast %cst_11 : f32 to vector<16x256xf32>
    %19 = arith.select %17, %15, %18 : vector<16x256xi1>, vector<16x256xf32>
    %c2 = arith.constant 2 : index
    %c0_12 = arith.constant 0 : index
    %c0_13 = arith.constant 0 : index
    %20 = vector.load %arg2[%c2, %c0_12, %c0_13] : memref<3x32x16xf32, #tpu.memory_space<vmem>>, vector<1x32x16xf32>
    %21 = vector.shape_cast %20 : vector<1x32x16xf32> to vector<32x16xf32>
    %cst_14 = arith.constant dense<0.000000e+00> : vector<32x256xf32>
    %22 = tpu.matmul %21, %19, %cst_14 {dimension_numbers = #tpu.dot_dimension_numbers<[1], [0], [0], [1], [0, 0, 1, 1], [], []>} : vector<32x16xf32>, vector<16x256xf32>, vector<32x256xf32> -> vector<32x256xf32>
    %23 = arith.addf %14, %22 : vector<32x256xf32>
    %c0_15 = arith.constant 0 : index
    %c0_16 = arith.constant 0 : index
    %24 = vector.load %arg3[%c0_15, %c0_16] : memref<32x1xf32, #tpu.memory_space<vmem>>, vector<32x1xf32>
    %25 = vector.broadcast %24 : vector<32x1xf32> to vector<32x256xf32>
    %26 = arith.addf %23, %25 : vector<32x256xf32>
    %cst_17 = arith.constant 0.000000e+00 : f32
    %27 = vector.broadcast %cst_17 : f32 to vector<32x256xf32>
    %28 = arith.maximumf %26, %27 : vector<32x256xf32>
    %29 = arith.truncf %28 : vector<32x256xf32> to vector<32x256xbf16>
    %c0_18 = arith.constant 0 : index
    %c0_19 = arith.constant 0 : index
    %c0_20 = arith.constant 0 : index
    %30 = vector.load %arg4[%c0_18, %c0_19, %c0_20] : memref<1x32x256xbf16, #tpu.memory_space<vmem>>, vector<1x32x256xbf16>
    %31 = vector.shape_cast %30 : vector<1x32x256xbf16> to vector<32x256xbf16>
    %32 = vector.shape_cast %29 : vector<32x256xbf16> to vector<1x32x256xbf16>
    tpu.vector_store %arg4[%c0_18, %c0_19, %c0_20], %32 {strides = array<i32>} : memref<1x32x256xbf16, #tpu.memory_space<vmem>>, vector<1x32x256xbf16>,
    return
  }
  func.func @transform_0(%arg0: i32) -> (i32, i32, i32) {
    %c0_i32 = arith.constant 0 : i32
    %c0_i32_0 = arith.constant 0 : i32
    %c0_i32_1 = arith.constant 0 : i32
    return %arg0, %c0_i32, %c0_i32_0 : i32, i32, i32
  }
  func.func @transform_1(%arg0: i32) -> (i32, i32, i32) {
    %c0_i32 = arith.constant 0 : i32
    %c0_i32_0 = arith.constant 0 : i32
    %c0_i32_1 = arith.constant 0 : i32
    %c0_i32_2 = arith.constant 0 : i32
    return %c0_i32, %c0_i32_0, %c0_i32_1 : i32, i32, i32
  }
  func.func @transform_2(%arg0: i32) -> (i32, i32) {
    %c0_i32 = arith.constant 0 : i32
    %c0_i32_0 = arith.constant 0 : i32
    %c0_i32_1 = arith.constant 0 : i32
    return %c0_i32, %c0_i32_0 : i32, i32
  }
  func.func @transform_3(%arg0: i32) -> (i32, i32, i32) {
    %c0_i32 = arith.constant 0 : i32
    %c0_i32_0 = arith.constant 0 : i32
    %c0_i32_1 = arith.constant 0 : i32
    return %arg0, %c0_i32, %c0_i32_0 : i32, i32, i32
  }
}

</mosaic_0001>

<bundles_post_ra>
// kernel: basic_conv1d.1
= control target key start
LH: loop header
LB: loop body
LE: loop exit
PB: predicated region body
PF: predicated region fallthrough
CT: control target
= control target key end

     0   :  { %s808_s12 = smov 0   ;;  %s908_s0 = inlined_call_operand.vmem [shape: f32[2,16,256], index: 0, kind: input, shape index: {}]   ;;  %s909_s1 = inlined_call_operand.vmem [shape: f32[3,32,16], index: 1, kind: input, shape index: {}]   ;;  %s910_s2 = inlined_call_operand.vmem [shape: f32[32,1], index: 2, kind: input, shape index: {}]   ;;  %s911_s3 = inlined_call_operand.vmem [shape: bf16[2,32,256], index: 3, kind: output, shape index: {}]  }
   0x1 LB: > { %s665_s13 = sadd.s32 4294967295, %s782_s12   ;;  %p669_p0 = scmp.ge.s32.totalorder %s782_s12, 1  ;;  %s782_s12 = sphi %s808_s12, %s13_s12  }
   0x2   : > { %p137_p1 = scmp.lt.s32.totalorder %s782_s12, 3 }
   0x4   : > { %p138_p2 = pnand %p669_p0, %p137_p1 }
   0x5   : > { %p161_p3 = scmp.lt.s32.totalorder (!%p138_p2), %s665_s13, 1  ;;  %v784_v0 = vmov (!%p138_p2), 0.0   ;;  %s785_s18 = smov (!%p138_p2), 127   ;;  %v674_v9 = vld [vmem:[%s909_s1 + $0x20] sm:$0xff] (!%p138_p2)  ;;  %vm206_vm0 = vcmask (!%p138_p2), 130048   ;;  %v675_v10 = vld [vmem:[%s909_s1 + $0x28] sm:$0xff] (!%p138_p2)  ;;  %v175_v18 = vlaneseq (!%p138_p2) }
   0x6   : > { %141 = sbr.rel (%p138_p2) target bundleno = 390 (0x186), region = 32  ;;  %283 = vmatprep.mubr.f32.mxu1 (!%p138_p2), %v784_v0  ;;  %384 = vmatprep.mubr.f32.mxu0 (!%p138_p2), %v784_v0  ;;  %s786_s19 = smov (!%p138_p2), 1   ;;  %v676_v11 = vld [vmem:[%s909_s1 + $0x30] sm:$0xff] (!%p138_p2)  ;;  %v677_v12 = vld [vmem:[%s909_s1 + $0x38] sm:$0xff] (!%p138_p2)  ;;  %v542_v13 = vld [vmem:[%s910_s2] sm:$0xff] (!%p138_p2)  ;;  %v787_v15 = vmov (!%p138_p2), 0  }
   0x7   : > { %v543_v14 = vld [vmem:[%s910_s2 + $0x8] sm:$0xff] (!%p138_p2)  ;;  %774 = vset.pattern.permute.xlu0 (!%p138_p2), %v787_v15  ;;  %775 = vset.pattern.permute.xlu1 (!%p138_p2), %v787_v15  ;;  %v544_v16 = vld [vmem:[%s910_s2 + $0x10] sm:$0xff] (!%p138_p2)  ;;  %v545_v17 = vld [vmem:[%s910_s2 + $0x18] sm:$0xff] (!%p138_p2)  ;;  %v176_v21 = vand.u32 (!%p138_p2), 127, %v175_v18 }
   0x8   : > { %v197_v45 = vld [vmem:[%s909_s1] sm:$0xff] (!%p138_p2)  ;;  %v199_v46 = vld [vmem:[%s909_s1 + $0x10] sm:$0xff] (!%p138_p2)  ;;  %v198_v47 = vld [vmem:[%s909_s1 + $0x8] sm:$0xff] (!%p138_p2) }
   0x9   : > { %v177_v24 = vadd.s32 (!%p138_p2), 128, %v176_v21  ;;  %vm417_vm1 = vcmp.lt.s32.totalorder (!%p138_p2), %v176_v21, 127  ;;  %vm186_vm2 = vcmp.lt.s32.totalorder (!%p138_p2), %v176_v21, 1  ;;  %vm191_vm3 = vcmp.ge.s32.totalorder (!%p138_p2), %v176_v21, 1  ;;  %v200_v48 = vld [vmem:[%s909_s1 + $0x18] sm:$0xff] (!%p138_p2)  ;;  %v688_v49 = vld [vmem:[%s909_s1 + $0x40] sm:$0xff] (!%p138_p2) }
   0xa   : > { %vm717_vm5 = vmpackc.low (!%p138_p2), %vm191_vm3, %vm191_vm3  ;;  %v689_v50 = vld [vmem:[%s909_s1 + $0x48] sm:$0xff] (!%p138_p2)  ;;  %v690_v51 = vld [vmem:[%s909_s1 + $0x50] sm:$0xff] (!%p138_p2) }
   0xb   : > { %vm423_vm4 = vcmp.lt.s32.totalorder (!%p138_p2), %v177_v24, 255  ;;  %v691_v52 = vld [vmem:[%s909_s1 + $0x58] sm:$0xff] (!%p138_p2) }
   0xc   : > { %vm720_vm6 = vmpackc.low (!%p138_p2), %vm423_vm4, %vm423_vm4 }
   0xd   : > { %s913_s13 = smov (!%p161_p3, %s665_s13), 1 }
   0xe   : > { %s704_s14 = sshll.u32 %s913_s13, 5 }
   0xf   : > { %s165_s17 = scalar_lea.vmem %s908_s0, %s704_s14  ;;  %s170_s30 = scalar_lea.vmem %s911_s3, %s704_s14 }
  0x10   : > { %v171_v1 = vld [vmem:[%s165_s17] sm:$0xff]  ;;  %v173_v2 = vld [vmem:[%s165_s17 + $0x10] sm:$0xff]  ;;  %v172_v3 = vld [vmem:[%s165_s17 + $0x8] sm:$0xff] }
  0x11   : > { %v764_v4 = vpack.i.bf16 %v173_v2, %v171_v1  ;;  %v174_v5 = vld [vmem:[%s165_s17 + $0x18] sm:$0xff]  ;;  %v712_v6 = vpack.c.bf16 %v173_v2, %v171_v1 }
  0x12   : > { %v710_v7 = vpack.c.bf16 %v174_v5, %v172_v3  ;;  %v769_v8 = vpack.i.bf16 %v174_v5, %v172_v3 }
  0x13   : > { %765 = vrot.lane.b32.xlu1 %v764_v4, %s785_s18  ;;  %755 = vrot.lane.b32.xlu0 %v764_v4, %s786_s19 }
  0x14   : > { %711 = vmatprep.subr.bf16.mxu1 %v710_v7 }
  0x15   : > { %713 = vmatpush1.bf16.msra.mxu1 %v712_v6 }
  0x17   : > { %770 = vrot.lane.b32.xlu1 %v769_v8, %s785_s18  ;;  %760 = vrot.lane.b32.xlu0 %v769_v8, %s786_s19 }
  0x18   : > { %678 = vmatmul.mubr.msk.f32.vlgmr.msra.gmra.mrb[0].mxu1 %vm206_vm0, %v674_v9 }
  0x19   : > { %289 = vmatprep.mubr.f32.mxu1 %v784_v0 }
  0x1b   : > { %548 = vperm.xlu0 %774, %v542_v13   ;;  %553 = vperm.xlu1 %775, %v543_v14  }
  0x1c   : > { %679 = vmatmul.mubr.msk.f32.gmra.mrb[2].mxu1 %vm206_vm0, %v675_v10 }
  0x1d   : > { %295 = vmatprep.mubr.f32.mxu1 %v784_v0 }
  0x1f   : > { %558 = vperm.xlu1 %775, %v544_v16   ;;  %563 = vperm.xlu0 %774, %v545_v17  }
  0x20   : > { %680 = vmatmul.mubr.msk.f32.gmra.mrb[4].mxu1 %vm206_vm0, %v676_v11 }
  0x21   : > { %301 = vmatprep.mubr.f32.mxu1 %v784_v0 }
  0x24   : > { %681 = vmatmul.mubr.msk.f32.gmra.mrb[6].mxu1 %vm206_vm0, %v677_v12 }
  0x25   : > { %396 = vmatprep.mubr.f32.mxu1 %v784_v0 }
  0x85   : > { %v766_v19 = vpop.permute.xlu1 %765  ;;  %v756_v20 = vpop.permute.xlu0 %755 }
  0x86   : > { %v768_v22 = vunpack.i.h.bf16 %v766_v19  ;;  %v767_v23 = vunpack.i.l.bf16 %v766_v19  ;;  %v758_v31 = vunpack.i.h.bf16 %v756_v20  ;;  %v757_v32 = vunpack.i.l.bf16 %v756_v20 }
  0x89   : > { %v771_v25 = vpop.permute.xlu1 %770  ;;  %v761_v26 = vpop.permute.xlu0 %760 }
  0x8a   : > { %v773_v27 = vunpack.i.h.bf16 %v771_v25  ;;  %v772_v28 = vunpack.i.l.bf16 %v771_v25  ;;  %v763_v29 = vunpack.i.h.bf16 %v761_v26  ;;  %v762_v30 = vunpack.i.l.bf16 %v761_v26 }
  0x8c   : > { %v420_v33 = vsel %vm417_vm1, %v772_v28, %v767_v23  ;;  %v421_v34 = vsel %vm417_vm1, %v773_v27, %v768_v22  ;;  %v418_v35 = vsel %vm417_vm1, %v767_v23, %v772_v28  ;;  %v419_v36 = vsel %vm417_vm1, %v768_v22, %v773_v27 }
  0x8d   : > { %v187_v37 = vsel %vm186_vm2, %v757_v32, %v762_v30  ;;  %v188_v38 = vsel %vm186_vm2, %v758_v31, %v763_v29  ;;  %v719_v39 = vpack.c.bf16 %v421_v34, %v420_v33  ;;  %v189_v41 = vsel %vm186_vm2, %v762_v30, %v757_v32 }
  0x8e   : > { %v714_v40 = vpack.c.bf16 %v188_v38, %v187_v37  ;;  %v190_v42 = vsel %vm186_vm2, %v763_v29, %v758_v31  ;;  %v722_v44 = vpack.c.bf16 %v419_v36, %v418_v35 }
  0x8f   : > { %v716_v43 = vpack.c.bf16 %v190_v42, %v189_v41 }
  0x90   : > { %715 = vmatprep.subr.bf16.mxu0 %v714_v40  ;;  %724 = vmatprep.subr.bf16.mxu1 %v714_v40 }
  0x91   : > { %718 = vmatpush1.bf16.msk.msra.mxu0 %vm717_vm5, %v716_v43  ;;  %725 = vmatpush1.bf16.msk.msra.mxu1 %vm717_vm5, %v716_v43 }
  0x92   : > { %721 = vmatprep.subr.msk.bf16.mxu0 %vm720_vm6, %v719_v39 }
  0x94   : > { %684 = vmatmul.mubr.msk.f32.vlgmr.msra.gmra.mrb[0].mxu0 %vm206_vm0, %v197_v45  ;;  %686 = vmatmul.mubr.msk.f32.vlgmr.msra.gmra.mrb[4].mxu1 %vm206_vm0, %v199_v46 }
  0x95   : > { %723 = vmatpush1.bf16.msra.mxu0 %v722_v44  ;;  %390 = vmatprep.mubr.f32.mxu0 %v784_v0 }
  0x96   : > { %402 = vmatprep.mubr.f32.mxu1 %v784_v0 }
  0x98   : > { %685 = vmatmul.mubr.msk.f32.gmra.mrb[2].mxu0 %vm206_vm0, %v198_v47  ;;  %687 = vmatmul.mubr.msk.f32.gmra.mrb[6].mxu1 %vm206_vm0, %v200_v48 }
  0x99   : > { %509 = vmatprep.mubr.f32.mxu0 %v784_v0 }
  0x9a   : > { %v549_v62 = vpop.permute.xlu0 %548  ;;  %v554_v2 = vpop.permute.xlu1 %553 }
  0x9c   : > { %694 = vmatmul.mubr.msk.f32.vlgmr.msra.gmra.mrb[0].mxu0 %vm206_vm0, %v688_v49 }
  0x9d   : > { %515 = vmatprep.mubr.f32.mxu0 %v784_v0 }
  0x9e   : > { %v559_v15 = vpop.permute.xlu1 %558  ;;  %v564_v29 = vpop.permute.xlu0 %563 }
  0xa0   : > { %695 = vmatmul.mubr.msk.f32.gmra.mrb[2].mxu0 %vm206_vm0, %v689_v50 }
  0xa1   : > { %521 = vmatprep.mubr.f32.mxu0 %v784_v0 }
  0xa4   : > { %696 = vmatmul.mubr.msk.f32.gmra.mrb[4].mxu0 %vm206_vm0, %v690_v51 }
  0xa5   : > { %527 = vmatprep.mubr.f32.mxu0 %v784_v0 }
  0xa8   : > { %697 = vmatmul.mubr.msk.f32.gmra.mrb[6].mxu0 %vm206_vm0, %v691_v52 }
  0xeb   : > { %v285_v53 = vpop.f32.mrb[0].mxu1 }
  0xec   : > { %v287_v54 = vpop.f32.mrb[1].mxu1 }
  0xef   : > { %v291_v55 = vpop.f32.mrb[2].mxu1 }
  0xf0   : > { %v293_v56 = vpop.f32.mrb[3].mxu1 }
 0x167   : > { %v398_v57 = vpop.f32.mrb[4].mxu1 }
 0x168   : > { %v400_v58 = vpop.f32.mrb[5].mxu1 }
 0x16b   : > { %v404_v59 = vpop.f32.mrb[6].mxu1 }
 0x16c   : > { %v406_v60 = vpop.f32.mrb[7].mxu1 }
 0x16f   : > { %v511_v61 = vpop.f32.mrb[0].mxu0 }
 0x170   : > { %v726_v63 = vadd.f32 %v511_v61, %v285_v53  ;;  %v513_v1 = vpop.f32.mrb[1].mxu0 }
 0x171   : > { %v727_v0 = vadd.f32 %v513_v1, %v287_v54 }
 0x172   : > { %v566_v3 = vadd.f32 %v726_v63, %v549_v62 }
 0x173   : > { %v567_v4 = vadd.f32 %v727_v0, %v549_v62  ;;  %v517_v5 = vpop.f32.mrb[2].mxu0 }
 0x174   : > { %v574_v6 = vmax.f32 %v566_v3, 0.0  ;;  %v728_v7 = vadd.f32 %v517_v5, %v291_v55  ;;  %v519_v8 = vpop.f32.mrb[3].mxu0 }
 0x175   : > { %v575_v9 = vmax.f32 %v567_v4, 0.0  ;;  %v729_v10 = vadd.f32 %v519_v8, %v293_v56 }
 0x176   : > { %v568_v11 = vadd.f32 %v728_v7, %v554_v2 }
 0x177   : > { %v706_v12 = vpack.c.bf16 %v575_v9, %v574_v6  ;;  %v569_v13 = vadd.f32 %v729_v10, %v554_v2  ;;  %v523_v14 = vpop.f32.mrb[4].mxu0 }
 0x178   : > { %v576_v16 = vmax.f32 %v568_v11, 0.0  ;;  %v730_v17 = vadd.f32 %v523_v14, %v398_v57  ;;  %v525_v18 = vpop.f32.mrb[5].mxu0 }
 0x179   : > { %606 = vst [vmem:[%s170_s30] sm:$0xff] %v706_v12  ;;  %v577_v19 = vmax.f32 %v569_v13, 0.0  ;;  %v731_v20 = vadd.f32 %v525_v18, %v400_v58 }
 0x17a   : > { %v570_v21 = vadd.f32 %v730_v17, %v559_v15 }
 0x17b   : > { %v707_v22 = vpack.c.bf16 %v577_v19, %v576_v16  ;;  %v571_v23 = vadd.f32 %v731_v20, %v559_v15  ;;  %v529_v24 = vpop.f32.mrb[6].mxu0 }
 0x17c   : > { %v578_v25 = vmax.f32 %v570_v21, 0.0  ;;  %v732_v26 = vadd.f32 %v529_v24, %v404_v59  ;;  %v531_v27 = vpop.f32.mrb[7].mxu0 }
 0x17d   : > { %607 = vst [vmem:[%s170_s30 + $0x8] sm:$0xff] %v707_v22  ;;  %v579_v28 = vmax.f32 %v571_v23, 0.0  ;;  %v733_v30 = vadd.f32 %v531_v27, %v406_v60 }
 0x17e   : > { %v572_v31 = vadd.f32 %v732_v26, %v564_v29 }
 0x17f   : > { %v708_v32 = vpack.c.bf16 %v579_v28, %v578_v25  ;;  %v573_v33 = vadd.f32 %v733_v30, %v564_v29 }
 0x180   : > { %v580_v34 = vmax.f32 %v572_v31, 0.0 }
 0x181   : > { %608 = vst [vmem:[%s170_s30 + $0x10] sm:$0xff] %v708_v32  ;;  %v581_v35 = vmax.f32 %v573_v33, 0.0 }
 0x183   : > { %v709_v36 = vpack.c.bf16 %v581_v35, %v580_v34 }
 0x185   : > { %609 = vst [vmem:[%s170_s30 + $0x18] sm:$0xff] %v709_v36 }
 0x186 PF: > { %s13_s12 = sadd.s32 1, %s782_s12  }
 0x187   : > { %p10_p4 = scmp.ge.s32.totalorder %s13_s12, 4  }
 0x189   :  { %12 = sbr.rel (!%p10_p4) target bundleno = 1 (0x1), region = 64 }

</bundles_post_ra>
